<compile_context>
chip_gen: v7x
topology: tpu7x:2x2x1
jax: 0.10.0
libtpu: 0.0.40
codegen_flags: <defaults>
</compile_context>

<pallas_src>
import jax
import jax.numpy as jnp
from jax import lax
from jax.experimental import pallas as pl
from jax.experimental.pallas import tpu as pltpu


def _round_up(n, m):
    return -(-n // m) * m


def _pad2d(a, rows, cols):
    return jnp.pad(a, ((0, rows - a.shape[0]), (0, cols - a.shape[1])))


def _make_decoder_kernel(num_layers):
    """Fused decoder kernel for one batch tile.

    refs = (idx_ref, z_ref, emb_ref,
            w0_z, w0_e, b0, w1, b1, ..., w_{L-1}, b_{L-1},
            out_ref)

    concat([z, embedding[idx]]) @ W0 is computed as z @ W0_z + emb @ W0_e
    (W0 split along its input dim); the embedding gather is a one-hot matmul
    (MXU-friendly, no dynamic gather required).
    """

    def kernel(idx_ref, z_ref, emb_ref, *refs):
        out_ref = refs[-1]
        p = refs[:-1]
        cd = p[0].dtype                      # compute (matmul) dtype
        tb = idx_ref.shape[0]
        nb = emb_ref.shape[0]

        # ---- fused embedding lookup: one-hot @ table -----------------------
        idx = idx_ref[...]                                    # (TB, 1) int32
        iota = lax.broadcasted_iota(jnp.int32, (tb, nb), 1)   # (TB, NB)
        onehot = (iota == idx).astype(cd)
        emb = jnp.dot(onehot, emb_ref[...].astype(cd),
                      preferred_element_type=jnp.float32)     # (TB, Dz) f32

        # ---- layer 0: concat fused as split matmul --------------------------
        h = jnp.dot(z_ref[...].astype(cd), p[0][...],
                    preferred_element_type=jnp.float32)
        h = h + jnp.dot(emb.astype(cd), p[1][...],
                        preferred_element_type=jnp.float32)
        h = h + p[2][...]                                     # f32 bias
        if num_layers > 1:
            h = jnp.maximum(h, 0.0)                           # f32 ReLU

        # ---- remaining layers (fully unrolled, activations stay in vregs) ---
        for i in range(1, num_layers):
            w = p[3 + 2 * (i - 1)][...]
            b = p[4 + 2 * (i - 1)][...]
            h = jnp.dot(h.astype(cd), w,
                        preferred_element_type=jnp.float32) + b
            if i < num_layers - 1:
                h = jnp.maximum(h, 0.0)

        out_ref[...] = h.astype(out_ref.dtype)

    return kernel


def decoder_forward(z, batch_index, embedding, weights, biases, *,
                    block_b=512, compute_dtype=jnp.bfloat16):
    """Forward pass matching ConditionalAutoencoderDecoderML.forward.

    z           : (B, latent_dim) float32
    batch_index : (B, 1) (or (B,)) int32
    embedding   : (num_batches, batch_dim) float32
    weights     : list of (in_dim, out_dim) float32  (transpose of PyTorch)
    biases      : list of (1, out_dim) float32
    returns     : (B, out_channels) float32
    """
    z = jnp.asarray(z, jnp.float32)
    B, latent_dim = z.shape
    emb = jnp.asarray(embedding, jnp.float32)
    num_batches, batch_dim = emb.shape
    num_layers = len(weights)
    out_channels = weights[-1].shape[1]

    # ---- pad every layer's output (lane) dim to a multiple of 128 ----------
    out_dims = [w.shape[1] for w in weights]
    out_dims_p = [_round_up(d, 128) for d in out_dims]
    out_pad = out_dims_p[-1]

    cd = compute_dtype
    w0 = jnp.asarray(weights[0], jnp.float32)
    params = [
        _pad2d(w0[:latent_dim, :], latent_dim, out_dims_p[0]).astype(cd),  # W0_z
        _pad2d(w0[latent_dim:, :], batch_dim, out_dims_p[0]).astype(cd),   # W0_e
        _pad2d(jnp.asarray(biases[0], jnp.float32).reshape(1, -1),
               1, out_dims_p[0]),                                          # b0 (f32)
    ]
    for i in range(1, num_layers):
        params.append(_pad2d(jnp.asarray(weights[i], jnp.float32),
                             out_dims_p[i - 1], out_dims_p[i]).astype(cd))
        params.append(_pad2d(jnp.asarray(biases[i], jnp.float32).reshape(1, -1),
                             1, out_dims_p[i]))                            # f32

    # ---- tile & pad the batch (sublane) dimension ---------------------------
    TB = _round_up(min(block_b, _round_up(B, 8)), 8)
    Bp = _round_up(B, TB)
    zp = jnp.pad(z, ((0, Bp - B), (0, 0)))
    idx = jnp.asarray(batch_index, jnp.int32).reshape(B, -1)[:, :1]
    idxp = jnp.pad(idx, ((0, Bp - B), (0, 0)))    # padded rows use valid index 0

    grid = (Bp // TB,)

    def tile_spec(cols):
        return pl.BlockSpec((TB, cols), lambda i: (i, 0))

    def resident_spec(shape):
        return pl.BlockSpec(shape, lambda i: (0,) * len(shape))

    in_specs = [tile_spec(1), tile_spec(latent_dim), resident_spec(emb.shape)]
    in_specs += [resident_spec(p.shape) for p in params]

    # ---- cost estimate & explicit VMEM budget -------------------------------
    flops_per_row = 2 * num_batches * batch_dim
    flops_per_row += 2 * (latent_dim + batch_dim) * out_dims_p[0]
    for i in range(1, num_layers):
        flops_per_row += 2 * out_dims_p[i - 1] * out_dims_p[i]
    param_bytes = sum(int(p.size) * p.dtype.itemsize for p in params)
    bytes_accessed = (int(idxp.size) * 4 + int(zp.size) * 4 + int(emb.size) * 4
                      + param_bytes + Bp * out_pad * 4)
    cost = pl.CostEstimate(flops=int(flops_per_row) * Bp, transcendentals=0,
                           bytes_accessed=int(bytes_accessed))

    max_feat = max(out_dims_p)
    vmem_bytes = param_bytes + int(emb.size) * 4
    vmem_bytes += 2 * TB * (4 + latent_dim * 4 + out_pad * 4)  # double-buffered tiles
    vmem_bytes += 4 * TB * max_feat * 4                        # live activation headroom
    vmem_limit = int(min(max(2 * vmem_bytes, 16 * 2**20), 48 * 2**20))

    out = pl.pallas_call(
        _make_decoder_kernel(num_layers),
        out_shape=jax.ShapeDtypeStruct((Bp, out_pad), jnp.float32),
        grid_spec=pltpu.PrefetchScalarGridSpec(
            num_scalar_prefetch=0,
            grid=grid,
            in_specs=in_specs,
            out_specs=tile_spec(out_pad),
        ),
        compiler_params=pltpu.CompilerParams(
            dimension_semantics=("parallel",),
            vmem_limit_bytes=vmem_limit),
        cost_estimate=cost,
    )(idxp, zp, emb, *params)

    return out[:B, :out_channels]


def init_params(key, latent_dim, batch_dim, out_channels, hidden_dims, num_batches):
    """Deterministic synthetic parameter init (matches module shapes)."""
    keys = jax.random.split(key, 2 * (len(hidden_dims) + 1) + 1)
    weights, biases = [], []
    input_dim = latent_dim + batch_dim
    dims = list(hidden_dims) + [out_channels]
    ki = 0
    for h_dim in dims:
        w = jax.random.normal(keys[ki], (input_dim, h_dim), jnp.float32) * 0.1
        ki += 1
        b = jax.random.normal(keys[ki], (1, h_dim), jnp.float32) * 0.01
        ki += 1
        weights.append(w)
        biases.append(b)
        input_dim = h_dim
    embedding = jax.random.normal(keys[ki], (num_batches, batch_dim), jnp.float32) * 0.1
    return embedding, weights, biases


def reference_forward(z, batch_index, embedding, weights, biases,
                      compute_dtype=jnp.float32):
    """Pure-JAX reference (mimics the PyTorch module; matmuls in
    `compute_dtype` with f32 accumulation, bias/ReLU in f32)."""
    idx = jnp.asarray(batch_index, jnp.int32).reshape(z.shape[0], -1)[:, 0]
    batch_info = embedding[idx]
    h = jnp.concatenate([z, batch_info], axis=-1)
    for i, (w, b) in enumerate(zip(weights, biases)):
        h = jnp.dot(h.astype(compute_dtype),
                    jnp.asarray(w).astype(compute_dtype),
                    preferred_element_type=jnp.float32)
        h = h + jnp.asarray(b, jnp.float32).reshape(1, -1)
        if i < len(weights) - 1:
            h = jnp.maximum(h, 0.0)
    return h


if __name__ == "__main__":
    # Small shapes consistent with the module's forward.
    latent_dim = 8
    batch_dim = 8
    out_channels = 16
    hidden_dims = [32, 32]
    num_batches = 4
    B = 50  # deliberately not a multiple of the tile to exercise padding

    key = jax.random.PRNGKey(0)
    kz, kb, kp = jax.random.split(key, 3)

    z = jax.random.normal(kz, (B, latent_dim), jnp.float32)
    batch_index = jax.random.randint(kb, (B, 1), 0, num_batches, jnp.int32)
    embedding, weights, biases = init_params(
        kp, latent_dim, batch_dim, out_channels, hidden_dims, num_batches)

    # 1) f32 compute path, small batch tile -> multi-step grid (tight check)
    out_f32 = decoder_forward(z, batch_index, embedding, weights, biases,
                              block_b=16, compute_dtype=jnp.float32)
    out_f32 = jax.block_until_ready(out_f32)
    ref_f32 = reference_forward(z, batch_index, embedding, weights, biases,
                                compute_dtype=jnp.float32)
    assert out_f32.shape == (B, out_channels)
    assert jnp.allclose(out_f32, ref_f32, atol=1e-5, rtol=1e-5), "f32 mismatch"

    # 2) bf16-matmul / f32-accumulate path (default), single-step grid
    out_bf16 = decoder_forward(z, batch_index, embedding, weights, biases,
                               compute_dtype=jnp.bfloat16)
    out_bf16 = jax.block_until_ready(out_bf16)
    ref_bf16 = reference_forward(z, batch_index, embedding, weights, biases,
                                 compute_dtype=jnp.bfloat16)
    assert out_bf16.shape == (B, out_channels)
    assert jnp.allclose(out_bf16, ref_bf16, atol=5e-3, rtol=5e-3), "bf16 mismatch"

    print("KERNEL_OK")
</pallas_src>

<mosaic_0001>
module attributes {stable_mosaic.version = 11 : i64} {
  func.func @kernel(%arg0: i32, %arg1: memref<16x1xi32, #tpu.memory_space<vmem>>, %arg2: memref<16x8xf32, #tpu.memory_space<vmem>>, %arg3: memref<4x8xf32, #tpu.memory_space<vmem>>, %arg4: memref<8x128xf32, #tpu.memory_space<vmem>>, %arg5: memref<8x128xf32, #tpu.memory_space<vmem>>, %arg6: memref<1x128xf32, #tpu.memory_space<vmem>>, %arg7: memref<128x128xf32, #tpu.memory_space<vmem>>, %arg8: memref<1x128xf32, #tpu.memory_space<vmem>>, %arg9: memref<128x128xf32, #tpu.memory_space<vmem>>, %arg10: memref<1x128xf32, #tpu.memory_space<vmem>>, %arg11: memref<16x128xf32, #tpu.memory_space<vmem>>) attributes {dimension_semantics = [#tpu.dimension_semantics<parallel>], iteration_bounds = array<i64: 4>, scalar_prefetch = 0 : i64, scratch_operands = 0 : i64, tpu.core_type = #tpu.core_type<tc>, window_params = [{transform_indices = @transform_0, window_bounds = array<i64: 16, 1>}, {transform_indices = @transform_1, window_bounds = array<i64: 16, 8>}, {pipeline_mode = #tpu.pipeline_mode<synchronous>, transform_indices = @transform_2, window_bounds = array<i64: 4, 8>}, {pipeline_mode = #tpu.pipeline_mode<synchronous>, transform_indices = @transform_3, window_bounds = array<i64: 8, 128>}, {pipeline_mode = #tpu.pipeline_mode<synchronous>, transform_indices = @transform_4, window_bounds = array<i64: 8, 128>}, {pipeline_mode = #tpu.pipeline_mode<synchronous>, transform_indices = @transform_5, window_bounds = array<i64: 1, 128>}, {pipeline_mode = #tpu.pipeline_mode<synchronous>, transform_indices = @transform_6, window_bounds = array<i64: 128, 128>}, {pipeline_mode = #tpu.pipeline_mode<synchronous>, transform_indices = @transform_7, window_bounds = array<i64: 1, 128>}, {pipeline_mode = #tpu.pipeline_mode<synchronous>, transform_indices = @transform_8, window_bounds = array<i64: 128, 128>}, {pipeline_mode = #tpu.pipeline_mode<synchronous>, transform_indices = @transform_9, window_bounds = array<i64: 1, 128>}, {transform_indices = @transform_10, window_bounds = array<i64: 16, 128>}]} {
    %c0 = arith.constant 0 : index
    %c0_0 = arith.constant 0 : index
    %0 = vector.load %arg1[%c0, %c0_0] : memref<16x1xi32, #tpu.memory_space<vmem>>, vector<16x1xi32>
    %1 = tpu.iota {dimensions = array<i32: 1>} : vector<16x4xi32>
    %2 = vector.broadcast %0 : vector<16x1xi32> to vector<16x4xi32>
    %3 = arith.cmpi eq, %1, %2 : vector<16x4xi32>
    %4 = arith.extui %3 : vector<16x4xi1> to vector<16x4xi32>
    %5 = arith.sitofp %4 : vector<16x4xi32> to vector<16x4xf32>
    %c0_1 = arith.constant 0 : index
    %c0_2 = arith.constant 0 : index
    %6 = vector.load %arg3[%c0_1, %c0_2] : memref<4x8xf32, #tpu.memory_space<vmem>>, vector<4x8xf32>
    %cst = arith.constant dense<0.000000e+00> : vector<16x8xf32>
    %7 = tpu.matmul %5, %6, %cst {dimension_numbers = #tpu.dot_dimension_numbers<[1], [0], [0], [1], [0, 0, 1, 1], [], []>} : vector<16x4xf32>, vector<4x8xf32>, vector<16x8xf32> -> vector<16x8xf32>
    %c0_3 = arith.constant 0 : index
    %c0_4 = arith.constant 0 : index
    %8 = vector.load %arg2[%c0_3, %c0_4] : memref<16x8xf32, #tpu.memory_space<vmem>>, vector<16x8xf32>
    %c0_5 = arith.constant 0 : index
    %c0_6 = arith.constant 0 : index
    %9 = vector.load %arg4[%c0_5, %c0_6] : memref<8x128xf32, #tpu.memory_space<vmem>>, vector<8x128xf32>
    %cst_7 = arith.constant dense<0.000000e+00> : vector<16x128xf32>
    %10 = tpu.matmul %8, %9, %cst_7 {dimension_numbers = #tpu.dot_dimension_numbers<[1], [0], [0], [1], [0, 0, 1, 1], [], []>} : vector<16x8xf32>, vector<8x128xf32>, vector<16x128xf32> -> vector<16x128xf32>
    %c0_8 = arith.constant 0 : index
    %c0_9 = arith.constant 0 : index
    %11 = vector.load %arg5[%c0_8, %c0_9] : memref<8x128xf32, #tpu.memory_space<vmem>>, vector<8x128xf32>
    %cst_10 = arith.constant dense<0.000000e+00> : vector<16x128xf32>
    %12 = tpu.matmul %7, %11, %cst_10 {dimension_numbers = #tpu.dot_dimension_numbers<[1], [0], [0], [1], [0, 0, 1, 1], [], []>} : vector<16x8xf32>, vector<8x128xf32>, vector<16x128xf32> -> vector<16x128xf32>
    %13 = arith.addf %10, %12 : vector<16x128xf32>
    %c0_11 = arith.constant 0 : index
    %c0_12 = arith.constant 0 : index
    %14 = vector.load %arg6[%c0_11, %c0_12] : memref<1x128xf32, #tpu.memory_space<vmem>>, vector<1x128xf32>
    %15 = vector.broadcast %14 : vector<1x128xf32> to vector<16x128xf32>
    %16 = arith.addf %13, %15 : vector<16x128xf32>
    %cst_13 = arith.constant 0.000000e+00 : f32
    %17 = vector.broadcast %cst_13 : f32 to vector<16x128xf32>
    %18 = arith.maximumf %16, %17 : vector<16x128xf32>
    %c0_14 = arith.constant 0 : index
    %c0_15 = arith.constant 0 : index
    %19 = vector.load %arg7[%c0_14, %c0_15] : memref<128x128xf32, #tpu.memory_space<vmem>>, vector<128x128xf32>
    %c0_16 = arith.constant 0 : index
    %c0_17 = arith.constant 0 : index
    %20 = vector.load %arg8[%c0_16, %c0_17] : memref<1x128xf32, #tpu.memory_space<vmem>>, vector<1x128xf32>
    %cst_18 = arith.constant dense<0.000000e+00> : vector<16x128xf32>
    %21 = tpu.matmul %18, %19, %cst_18 {dimension_numbers = #tpu.dot_dimension_numbers<[1], [0], [0], [1], [0, 0, 1, 1], [], []>} : vector<16x128xf32>, vector<128x128xf32>, vector<16x128xf32> -> vector<16x128xf32>
    %22 = vector.broadcast %20 : vector<1x128xf32> to vector<16x128xf32>
    %23 = arith.addf %21, %22 : vector<16x128xf32>
    %cst_19 = arith.constant 0.000000e+00 : f32
    %24 = vector.broadcast %cst_19 : f32 to vector<16x128xf32>
    %25 = arith.maximumf %23, %24 : vector<16x128xf32>
    %c0_20 = arith.constant 0 : index
    %c0_21 = arith.constant 0 : index
    %26 = vector.load %arg9[%c0_20, %c0_21] : memref<128x128xf32, #tpu.memory_space<vmem>>, vector<128x128xf32>
    %c0_22 = arith.constant 0 : index
    %c0_23 = arith.constant 0 : index
    %27 = vector.load %arg10[%c0_22, %c0_23] : memref<1x128xf32, #tpu.memory_space<vmem>>, vector<1x128xf32>
    %cst_24 = arith.constant dense<0.000000e+00> : vector<16x128xf32>
    %28 = tpu.matmul %25, %26, %cst_24 {dimension_numbers = #tpu.dot_dimension_numbers<[1], [0], [0], [1], [0, 0, 1, 1], [], []>} : vector<16x128xf32>, vector<128x128xf32>, vector<16x128xf32> -> vector<16x128xf32>
    %29 = vector.broadcast %27 : vector<1x128xf32> to vector<16x128xf32>
    %30 = arith.addf %28, %29 : vector<16x128xf32>
    %c0_25 = arith.constant 0 : index
    %c0_26 = arith.constant 0 : index
    %31 = vector.load %arg11[%c0_25, %c0_26] : memref<16x128xf32, #tpu.memory_space<vmem>>, vector<16x128xf32>
    tpu.vector_store %arg11[%c0_25, %c0_26], %30 {strides = array<i32>} : memref<16x128xf32, #tpu.memory_space<vmem>>, vector<16x128xf32>,
    return
  }
  func.func @transform_0(%arg0: i32) -> (i32, i32) {
    %c0_i32 = arith.constant 0 : i32
    %c0_i32_0 = arith.constant 0 : i32
    return %arg0, %c0_i32 : i32, i32
  }
  func.func @transform_1(%arg0: i32) -> (i32, i32) {
    %c0_i32 = arith.constant 0 : i32
    %c0_i32_0 = arith.constant 0 : i32
    return %arg0, %c0_i32 : i32, i32
  }
  func.func @transform_2(%arg0: i32) -> (i32, i32) {
    %c0_i32 = arith.constant 0 : i32
    %c0_i32_0 = arith.constant 0 : i32
    %c0_i32_1 = arith.constant 0 : i32
    return %c0_i32, %c0_i32_0 : i32, i32
  }
  func.func @transform_3(%arg0: i32) -> (i32, i32) {
    %c0_i32 = arith.constant 0 : i32
    %c0_i32_0 = arith.constant 0 : i32
    %c0_i32_1 = arith.constant 0 : i32
    return %c0_i32, %c0_i32_0 : i32, i32
  }
  func.func @transform_4(%arg0: i32) -> (i32, i32) {
    %c0_i32 = arith.constant 0 : i32
    %c0_i32_0 = arith.constant 0 : i32
    %c0_i32_1 = arith.constant 0 : i32
    return %c0_i32, %c0_i32_0 : i32, i32
  }
  func.func @transform_5(%arg0: i32) -> (i32, i32) {
    %c0_i32 = arith.constant 0 : i32
    %c0_i32_0 = arith.constant 0 : i32
    %c0_i32_1 = arith.constant 0 : i32
    return %c0_i32, %c0_i32_0 : i32, i32
  }
  func.func @transform_6(%arg0: i32) -> (i32, i32) {
    %c0_i32 = arith.constant 0 : i32
    %c0_i32_0 = arith.constant 0 : i32
    %c0_i32_1 = arith.constant 0 : i32
    return %c0_i32, %c0_i32_0 : i32, i32
  }
  func.func @transform_7(%arg0: i32) -> (i32, i32) {
    %c0_i32 = arith.constant 0 : i32
    %c0_i32_0 = arith.constant 0 : i32
    %c0_i32_1 = arith.constant 0 : i32
    return %c0_i32, %c0_i32_0 : i32, i32
  }
  func.func @transform_8(%arg0: i32) -> (i32, i32) {
    %c0_i32 = arith.constant 0 : i32
    %c0_i32_0 = arith.constant 0 : i32
    %c0_i32_1 = arith.constant 0 : i32
    return %c0_i32, %c0_i32_0 : i32, i32
  }
  func.func @transform_9(%arg0: i32) -> (i32, i32) {
    %c0_i32 = arith.constant 0 : i32
    %c0_i32_0 = arith.constant 0 : i32
    %c0_i32_1 = arith.constant 0 : i32
    return %c0_i32, %c0_i32_0 : i32, i32
  }
  func.func @transform_10(%arg0: i32) -> (i32, i32) {
    %c0_i32 = arith.constant 0 : i32
    %c0_i32_0 = arith.constant 0 : i32
    return %arg0, %c0_i32 : i32, i32
  }
}

</mosaic_0001>

<bundles_post_ra>
// kernel: tpu_custom_call.1
= control target key start
LH: loop header
LB: loop body
LE: loop exit
PB: predicated region body
PF: predicated region fallthrough
CT: control target
= control target key end

     0   :  { %15 = vsyncpa [#allocation3], 0  ;;  %s1633_s0 = inlined_call_operand.vmem [shape: s32[64,1], index: 0, kind: input, shape index: {}]   ;;  %s1634_s1 = inlined_call_operand.vmem [shape: f32[64,8], index: 1, kind: input, shape index: {}]   ;;  %s1635_s2 = inlined_call_operand.vmem [shape: f32[4,8], index: 2, kind: input, shape index: {}]   ;;  %s1636_s3 = inlined_call_operand.vmem [shape: f32[8,128], index: 3, kind: input, shape index: {}]   ;;  %s1637_s4 = inlined_call_operand.vmem [shape: f32[8,128], index: 4, kind: input, shape index: {}]   ;;  %s1638_s5 = inlined_call_operand.vmem [shape: f32[1,128], index: 5, kind: input, shape index: {}]   ;;  %s1639_s6 = inlined_call_operand.vmem [shape: f32[128,128], index: 6, kind: input, shape index: {}]   ;;  %s1640_s7 = inlined_call_operand.vmem [shape: f32[1,128], index: 7, kind: input, shape index: {}]   ;;  %s1641_s8 = inlined_call_operand.hbm [shape: f32[128,128], index: 8, kind: input, shape index: {}]   ;;  %s1642_s9 = inlined_call_operand.vmem [shape: f32[1,128], index: 9, kind: input, shape index: {}]   ;;  %s1643_s10 = inlined_call_operand.hbm [shape: f32[64,128], index: 10, kind: output, shape index: {}]  }
   0x1   :  { %16 = vsyncpa [#allocation4], 0 }
   0x2   :  { %18 = vsyncpa [#allocation4 + $0x1], 0  ;;  %s1420_s13 = smov 0   ;;  %s1422_s14 = smov 0  }
   0x3   :  { %s1424_s15 = smov 0   ;;  %s1426_s16 = smov 0  }
   0x4 LB: > { %s1441_s17 = sadd.s32 4294967295, %s1355_s16   ;;  %s979_s18 = sadd.s32 4294967294, %s1355_s16   ;;  %s1355_s16 = sphi %s1426_s16, %s1661_s16   ;;  %s1351_s15 = sphi %s1424_s15, %s1660_s15   ;;  %s1347_s14 = sphi %s1422_s14, %s1659_s14   ;;  %s1343_s13 = sphi %s1420_s13, %s1658_s13  }
   0x5   : > { %s1445_s19 = sadd.s32 1, %s1355_s16   ;;  %s251_s20 = sadd.s32 1, %s1351_s15 }
   0x6   : > { %s248_s21 = ssub.s32 %s1355_s16, %s1445_s19  ;;  %p261_p0 = scmp.ne.s32.totalorder %s1351_s15, %s1347_s14 }
   0x7   : > { %p249_p1 = scmp.eq.s32.totalorder %s248_s21, 0  ;;  %p262_p2 = scmp.eq.s32.totalorder %s1441_s17, 3 }
   0x8   : > { %p267_p3 = scmp.ne.s32.totalorder %s1347_s14, %s1343_s13  ;;  %p268_p4 = scmp.eq.s32.totalorder %s979_s18, 3 }
   0x9   : > { %s1456_s22 = scalar_select %p249_p1, %s1351_s15, %s251_s20  }
   0xa   : > { %p1458_p5 = por %p262_p2, %p261_p0  ;;  %p1462_p6 = por %p268_p4, %p267_p3 }
   0xb   : > { %p980_p7 = scmp.ge.s32.totalorder %s1355_s16, 1  ;;  %p275_p8 = scmp.lt.s32.totalorder %s1355_s16, 5 }
   0xc   : > { %s1648_s23 = scalar_select %p1458_p5, 1, 0 }
   0xd   : > { %s1649_s24 = scalar_select %p1462_p6, 1, 0 }
   0xe   : > { %p1644_p9 = scmp.eq.s32.totalorder %s1441_s17, 0  ;;  %p1469_p10 = pnand %p980_p7, %p275_p8 }
   0xf   : > { %s1357_s26 = smov [#allocation2]   ;;  %s1261_s11 = scalar_lea.hbm %s1641_s8, 2048 }
  0x10   : > { %s1650_s25 = scalar_select %p1469_p10, 1, 0 }
  0x11   : > { %s305_s27 = sshll.u32 %s1357_s26, 4  ;;  %p1210_p11 = pneg %p1469_p10  ;;  %s306_s27 = int_to_ptr.vmem [resolvable:$true] %s305_s27 }
  0x12   : > { %p1262_p13 = scmp.ne.s32.totalorder %s1641_s8, %s1261_s11  ;;  %p1268_p3 = scmp.lt.u32.totalorder %s1261_s11, %s1641_s8 }
  0x13   : > { %p1477_p12 = pnand %p1644_p9, %p1210_p11 }
  0x15   : > { %p1263_p0 = pneg %p1477_p12 }
  0x17   : > { %p1264_p1 = pnand %p1263_p0, %p1262_p13 }
  0x19   : > { %p1265_p2 = pneg %p1264_p1 }
  0x1b   : > { %p1270_p4 = pnand %p1268_p3, %p1265_p2 }
  0x1d   : > { %1273 = shalt.err (!%p1270_p4)
}
  0x1e   : > { %s1274_s26 = scalar_lea.vmem %s306_s27, 2048  ;;  %p1282_p9 = scmp.lt.s32.totalorder %s306_s27, %s306_s27 }
  0x1f   : > { %p1275_p7 = scmp.ne.s32.totalorder %s306_s27, %s1274_s26  ;;  %p1283_p6 = scmp.lt.s32.totalorder %s1274_s26, %s1274_s26 }
  0x21   : > { %p1277_p8 = pnand %p1275_p7, %p1263_p0  ;;  %p1284_p5 = por %p1283_p6, %p1282_p9 }
  0x23   : > { %p1278_p11 = pneg %p1277_p8 }
  0x25   : > { %p1285_p10 = pnand %p1284_p5, %p1278_p11 }
  0x27   : > { %1288 = shalt.err (!%p1285_p10)
}
  0x28   : > { %s1358_s29 = smov 128   ;;  %s1359_s30 = smov 8  }
  0x29   : > { %1213 = dma.hbm_to_vmem [thread:$0]  (!%p1477_p12), %s1641_s8, 2048, %s306_s27, [#allocation3], %s1358_s29, %s1358_s29, %s1359_s30  }
  0x2a   : > { %p1652_p13 = scmp.ne.s32.totalorder %s1650_s25, 0 }
  0x2b   : > { %p1653_p1 = scmp.eq.s32.totalorder (!%p1652_p13), %s1441_s17, 0 }
  0x2c   : > { %342 = sbr.rel (%p1652_p13) target bundleno = 1081 (0x439), region = 60 }
  0x33   : > { %1334 = dma.done.wait (%p1653_p1), [#allocation3], 2048   ;;  %p1654_p0 = pmov %p1653_p1 }
  0x34   : > { %s986_s11 = sshll.u32 %s1441_s17, 1  ;;  %v1360_v0 = vmov 0   ;;  %v414_v3 = vld [vmem:[%s1635_s2] sm:$0xf]  ;;  %vm422_vm0 = vcmask 1043456   ;;  %v400_v4 = vlaneseq  ;;  %vm415_vm1 = vcmask 31744  }
  0x35   : > { %1336 = vsyncadd (%p1654_p0), [#allocation3], 4294965248  ;;  %1260 = vset.pattern.permute.xlu0 %v1360_v0  ;;  %p386_p5 = scmp.lt.s32.totalorder %s986_s11, 7  ;;  %1053 = vmatprep.subr.msk.mxu0 %vm422_vm0, %v414_v3  ;;  %v1361_v7 = vmov 0.0   ;;  %v504_v11 = vld [vmem:[%s1637_s4] sm:$0xff]  ;;  %v680_v14 = vld [vmem:[%s1639_s6 + $0x8] sm:$0xff] }
  0x36   : > { %1054 = vmatpush3.msk.msra.mxu0 %vm422_vm0, %v414_v3  ;;  %v401_v5 = vand.u32 127, %v400_v4  ;;  %1058 = vmatprep.subr.mxu1 %v504_v11  ;;  %v503_v12 = vld [vmem:[%s1636_s3] sm:$0xff]  ;;  %v681_v15 = vld [vmem:[%s1639_s6 + $0x10] sm:$0xff]  ;;  %v682_v17 = vld [vmem:[%s1639_s6 + $0x18] sm:$0xff]  ;;  %vm505_vm4 = vcmask 64512   ;;  %s382_s18 = sand.u32 1, %s1347_s14  }
  0x37   : > { %s1663_s11 = smov (!%p386_p5, %s986_s11), 7  ;;  %1059 = vmatpush3.msra.mxu1 %v504_v11  ;;  %v679_v13 = vld [vmem:[%s1639_s6] sm:$0xff]  ;;  %v1142_v18 = vpack.c.bf16 %v682_v17, %v681_v15  ;;  %v684_v20 = vld [vmem:[%s1639_s6 + $0x28] sm:$0xff]  ;;  %v685_v22 = vld [vmem:[%s1639_s6 + $0x30] sm:$0xff]  ;;  %s985_s27 = sshll.u32 %s382_s18, 4 }
  0x38   : > { %s1647_s28 = sshll.u32 %s1663_s11, 3  ;;  %1063 = vmatprep.subr.mxu1 %v503_v12  ;;  %v1138_v16 = vpack.c.bf16 %v680_v14, %v679_v13  ;;  %v683_v19 = vld [vmem:[%s1639_s6 + $0x20] sm:$0xff]  ;;  %v686_v23 = vld [vmem:[%s1639_s6 + $0x38] sm:$0xff]  ;;  %v688_v26 = vld [vmem:[%s1639_s6 + $0x48] sm:$0xff]  ;;  %s1655_s12 = sshll.u32 %s1663_s11, 3 }
  0x39   : > { %s389_s20 = scalar_lea.vmem %s1633_s0, %s1647_s28  ;;  %v1146_v21 = vpack.c.bf16 %v684_v20, %v683_v19  ;;  %v1150_v24 = vpack.c.bf16 %v686_v23, %v685_v22  ;;  %v687_v25 = vld [vmem:[%s1639_s6 + $0x40] sm:$0xff]  ;;  %v689_v28 = vld [vmem:[%s1639_s6 + $0x50] sm:$0xff]  ;;  %v690_v29 = vld [vmem:[%s1639_s6 + $0x58] sm:$0xff]  ;;  %s395_s25 = scalar_lea.vmem %s1634_s1, %s1655_s12 }
  0x3a   : > { %v398_v1 = vld [vmem:[%s389_s20] sm:$0xff]  ;;  %v399_v2 = vld [vmem:[%s389_s20 + $0x8] sm:$0xff]  ;;  %1139 = vmatprep.subr.bf16.mxu0 %v1138_v16  ;;  %v1154_v27 = vpack.c.bf16 %v688_v26, %v687_v25  ;;  %v1158_v30 = vpack.c.bf16 %v690_v29, %v689_v28  ;;  %v693_v38 = vld [vmem:[%s1639_s6 + $0x70] sm:$0xff]  ;;  %s384_s20 = scalar_lea.vmem [#allocation5], %s985_s27  ;;  %s1007_s11 = sshll.u32 %s1441_s17, 8 }
  0x3b   : > { %403 = vperm.xlu0 %1260, %v398_v1   ;;  %v691_v31 = vld [vmem:[%s1639_s6 + $0x60] sm:$0xff]  ;;  %v692_v32 = vld [vmem:[%s1639_s6 + $0x68] sm:$0xff]  ;;  %v694_v39 = vld [vmem:[%s1639_s6 + $0x78] sm:$0xff]  ;;  %s893_s21 = sshll.u32 %s384_s20, 4  ;;  %s1590_s30 = scalar_lea.hbm %s1643_s10, %s1007_s11  ;;  %s1585_s21 = int_to_ptr.vmem [resolvable:$true] %s893_s21 }
  0x3c   : > { %v1162_v33 = vpack.c.bf16 %v692_v32, %v691_v31  ;;  %v501_v36 = vld [vmem:[%s395_s25] sm:$0xff]  ;;  %v502_v37 = vld [vmem:[%s395_s25 + $0x8] sm:$0xff]  ;;  %v1166_v40 = vpack.c.bf16 %v694_v39, %v693_v38  ;;  %v781_v43 = vld [vmem:[#allocation2 + $0x10] sm:$0xff]  ;;  %s1592_s12 = scalar_lea.sflag [#allocation4], %s382_s18  ;;  %s1289_s27 = scalar_lea.vmem %s1585_s21, 256 }
  0x3d   : > { %v779_v41 = vld [vmem:[#allocation2] sm:$0xff]  ;;  %v780_v42 = vld [vmem:[#allocation2 + $0x8] sm:$0xff]  ;;  %v782_v45 = vld [vmem:[#allocation2 + $0x18] sm:$0xff]  ;;  %p1290_p6 = scmp.ne.s32.totalorder %s1585_s21, %s1289_s27  ;;  %p1656_p9 = scmp.ne.s32.totalorder %s1648_s23, 0 }
  0x3e   : > { %v1170_v44 = vpack.c.bf16 %v780_v42, %v779_v41  ;;  %v1174_v46 = vpack.c.bf16 %v782_v45, %v781_v43  ;;  %v783_v47 = vld [vmem:[#allocation2 + $0x20] sm:$0xff]  ;;  %v784_v48 = vld [vmem:[#allocation2 + $0x28] sm:$0xff]  ;;  %v785_v50 = vld [vmem:[#allocation2 + $0x30] sm:$0xff]  ;;  %s1362_s17 = smov [#allocation5]  }
  0x3f   : > { %406 = vperm.xlu0 %1260, %v399_v2   ;;  %v1178_v49 = vpack.c.bf16 %v784_v48, %v783_v47  ;;  %v786_v51 = vld [vmem:[#allocation2 + $0x38] sm:$0xff]  ;;  %v787_v53 = vld [vmem:[#allocation2 + $0x40] sm:$0xff]  ;;  %v788_v54 = vld [vmem:[#allocation2 + $0x48] sm:$0xff]  ;;  %p1291_p10 = pnand %p1290_p6, %p1656_p9  ;;  %s1293_s25 = sshll.u32 %s1362_s17, 4  ;;  %s1294_s25 = int_to_ptr.vmem [resolvable:$false] %s1293_s25 }
  0x40   : > { %v1182_v52 = vpack.c.bf16 %v786_v51, %v785_v50  ;;  %v1186_v55 = vpack.c.bf16 %v788_v54, %v787_v53  ;;  %v789_v56 = vld [vmem:[#allocation2 + $0x50] sm:$0xff]  ;;  %v790_v57 = vld [vmem:[#allocation2 + $0x58] sm:$0xff]  ;;  %v791_v59 = vld [vmem:[#allocation2 + $0x60] sm:$0xff]  ;;  %s1295_s28 = scalar_lea.vmem %s1294_s25, 512  ;;  %p1296_p2 = scmp.lt.s32.totalorder %s1585_s21, %s1294_s25 }
  0x41   : > { %v1190_v58 = vpack.c.bf16 %v790_v57, %v789_v56  ;;  %v792_v60 = vld [vmem:[#allocation2 + $0x68] sm:$0xff]  ;;  %v999_v62 = vld [vmem:[%s1638_s5] ss:$0 sm:$0xff]  ;;  %p1292_p12 = pneg %p1291_p10  ;;  %p1297_p3 = scmp.lt.s32.totalorder %s1295_s28, %s1289_s27 }
  0x42   : > { %v1194_v61 = vpack.c.bf16 %v792_v60, %v791_v59  ;;  %v1001_v15 = vld [vmem:[%s1642_s9] ss:$0 sm:$0xff] }
  0x43   : > { %p1298_p4 = por %p1297_p3, %p1296_p2 }
  0x45   : > { %p1299_p7 = pnand %p1298_p4, %p1292_p12 }
  0xba   : > { %v404_v6 = vpop.permute.xlu0 %403 }
  0xbb   : > { %vm408_vm2 = vcmp.eq.s32.totalorder %v401_v5, %v404_v6  ;;  %v794_v6 = vld [vmem:[#allocation2 + $0x78] sm:$0xff] }
  0xbc   : > { %v990_v8 = vsel %vm408_vm2, 1.0, %v1361_v7 }
  0xbd   : > { %1055 = vmatprep.mubr.msk.f32.mxu0 %vm415_vm1, %v990_v8  ;;  %v1000_v8 = vld [vmem:[%s1640_s7] ss:$0 sm:$0xff] }
  0xbe   : > { %v407_v9 = vpop.permute.xlu0 %406 }
  0xbf   : > { %vm409_vm3 = vcmp.eq.s32.totalorder %v401_v5, %v407_v9  ;;  %v793_v5 = vld [vmem:[#allocation2 + $0x70] sm:$0xff] }
  0xc0   : > { %v991_v10 = vsel %vm409_vm3, 1.0, %v1361_v7  ;;  %v1198_v7 = vpack.c.bf16 %v794_v6, %v793_v5 }
  0xc1   : > { %1056 = vmatmul.mubr.msk.f32.vlgmr.msra.gmra.mrb[0].mxu0 %vm415_vm1, %v991_v10 }
  0xc2   : > { %1141 = vmatpush3.bf16.msra.mxu0 %v1138_v16 }
  0xc3   : > { %1143 = vmatprep.subr.bf16.mxu0 %v1142_v18 }
  0xc6   : > { %1145 = vmatpush3.bf16.msra.mxu0 %v1142_v18 }
  0xc7   : > { %1147 = vmatprep.subr.bf16.mxu0 %v1146_v21 }
  0xca   : > { %1149 = vmatpush3.bf16.msra.mxu0 %v1146_v21 }
  0xcb   : > { %1151 = vmatprep.subr.bf16.mxu0 %v1150_v24 }
  0xce   : > { %1153 = vmatpush3.bf16.msra.mxu0 %v1150_v24 }
  0xcf   : > { %1155 = vmatprep.subr.bf16.mxu0 %v1154_v27 }
  0xd2   : > { %1157 = vmatpush3.bf16.msra.mxu0 %v1154_v27 }
  0xd3   : > { %1159 = vmatprep.subr.bf16.mxu0 %v1158_v30 }
  0xd6   : > { %1161 = vmatpush3.bf16.msra.mxu0 %v1158_v30 }
  0xd7   : > { %1163 = vmatprep.subr.bf16.mxu0 %v1162_v33 }
  0xda   : > { %1165 = vmatpush3.bf16.msra.mxu0 %v1162_v33 }
  0xdb   : > { %1167 = vmatprep.subr.bf16.mxu0 %v1166_v40 }
  0xde   : > { %1169 = vmatpush3.bf16.msra.mxu0 %v1166_v40 }
 0x194   : > { %v1057_v34 = vpop.f32.mrb[0].mxu0 }
 0x195   : > { %v492_v35 = vpop.f32.mrb[1].mxu0 }
 0x196   : > { %1060 = vmatprep.mubr.msk.f32.mxu1 %vm505_vm4, %v492_v35 }
 0x197   : > { %1061 = vmatmul.mubr.msk.f32.vlgmr.msra.gmra.mrb[0].mxu1 %vm505_vm4, %v1057_v34 }
 0x198   : > { %1064 = vmatpush3.msra.mxu1 %v503_v12  ;;  %1065 = vmatprep.mubr.msk.f32.mxu1 %vm505_vm4, %v501_v36 }
 0x199   : > { %1171 = vmatprep.subr.bf16.mxu1 %v1170_v44 }
 0x19f   : > { %1066 = vmatmul.mubr.msk.f32.vlgmr.msra.gmra.mrb[0].mxu1 %vm505_vm4, %v502_v37 }
 0x1a0   : > { %1173 = vmatpush3.bf16.msra.mxu1 %v1170_v44 }
 0x1a1   : > { %1175 = vmatprep.subr.bf16.mxu1 %v1174_v46 }
 0x1a4   : > { %1177 = vmatpush3.bf16.msra.mxu1 %v1174_v46 }
 0x1a5   : > { %1179 = vmatprep.subr.bf16.mxu1 %v1178_v49 }
 0x1a8   : > { %1181 = vmatpush3.bf16.msra.mxu1 %v1178_v49 }
 0x1a9   : > { %1183 = vmatprep.subr.bf16.mxu1 %v1182_v52 }
 0x1ac   : > { %1185 = vmatpush3.bf16.msra.mxu1 %v1182_v52 }
 0x1ad   : > { %1187 = vmatprep.subr.bf16.mxu1 %v1186_v55 }
 0x1b0   : > { %1189 = vmatpush3.bf16.msra.mxu1 %v1186_v55 }
 0x1b1   : > { %1191 = vmatprep.subr.bf16.mxu1 %v1190_v58 }
 0x1b4   : > { %1193 = vmatpush3.bf16.msra.mxu1 %v1190_v58 }
 0x1b5   : > { %1195 = vmatprep.subr.bf16.mxu1 %v1194_v61 }
 0x1b8   : > { %1197 = vmatpush3.bf16.msra.mxu1 %v1194_v61 }
 0x1b9   : > { %1199 = vmatprep.subr.bf16.mxu1 %v1198_v7 }
 0x1bc   : > { %1201 = vmatpush3.bf16.msra.mxu1 %v1198_v7 }
 0x272   : > { %v1067_v63 = vpop.f32.mrb[0].mxu1 }
 0x273   : > { %v676_v0 = vadd.f32 %v1067_v63, %v999_v62  ;;  %v659_v1 = vpop.f32.mrb[1].mxu1 }
 0x274   : > { %v675_v2 = vadd.f32 %v999_v62, %v659_v1 }
 0x275   : > { %v678_v4 = vmax.f32 %v676_v0, 0.0 }
 0x276   : > { %v677_v3 = vmax.f32 %v675_v2, 0.0 }
 0x278   : > { %1100 = vmatprep.mubr.f32.mxu0 %v677_v3 }
 0x279   : > { %1101 = vmatmul.mubr.f32.vlgmr.msra.gmra.mrb[2].mxu0 %v678_v4 }
 0x34c   : > { %v1102_v9 = vpop.f32.mrb[2].mxu0 }
 0x34d   : > { %v774_v10 = vadd.f32 %v1102_v9, %v1000_v8  ;;  %v768_v11 = vpop.f32.mrb[3].mxu0 }
 0x34e   : > { %v769_v12 = vadd.f32 %v1000_v8, %v768_v11 }
 0x34f   : > { %v778_v14 = vmax.f32 %v774_v10, 0.0 }
 0x350   : > { %v777_v13 = vmax.f32 %v769_v12, 0.0 }
 0x352   : > { %1135 = vmatprep.mubr.f32.mxu1 %v777_v13 }
 0x353   : > { %1136 = vmatmul.mubr.f32.vlgmr.msra.gmra.mrb[2].mxu1 %v778_v14 }
 0x426   : > { %v1137_v16 = vpop.f32.mrb[2].mxu1 }
 0x427   : > { %v874_v17 = vadd.f32 %v1137_v16, %v1001_v15  ;;  %v868_v18 = vpop.f32.mrb[3].mxu1 }
 0x428   : > { %v869_v19 = vadd.f32 %v1001_v15, %v868_v18 }
 0x429   : > { %878 = vst [vmem:[%s384_s20 + $0x8] sm:$0xff] %v874_v17 }
 0x42a   : > { %877 = vst [vmem:[%s384_s20] sm:$0xff] %v869_v19 }
 0x42b   : > { %1302 = shalt.err (!%p1299_p7)
}
 0x42c   : > { %s1303_s18 = scalar_lea.hbm %s1590_s30, 256  ;;  %s1307_s26 = scalar_lea.hbm %s1643_s10, 1024 }
 0x42d   : > { %p1304_p8 = scmp.ne.s32.totalorder %s1590_s30, %s1303_s18  ;;  %p1308_p1 = scmp.lt.u32.totalorder %s1590_s30, %s1643_s10 }
 0x42e   : > { %p1309_p0 = scmp.lt.u32.totalorder %s1307_s26, %s1303_s18  ;;  %p1311_p6 = scmp.lt.u32.totalorder %s1303_s18, %s1590_s30 }
 0x42f   : > { %p1305_p11 = pnand %p1304_p8, %p1656_p9 }
 0x430   : > { %p1310_p5 = por %p1309_p0, %p1308_p1 }
 0x431   : > { %p1306_p13 = pneg %p1305_p11 }
 0x432   : > { %p1312_p10 = por %p1311_p6, %p1310_p5 }
 0x434   : > { %p1313_p12 = pnand %p1312_p10, %p1306_p13 }
 0x436   : > { %1316 = shalt.err (!%p1313_p12)
}
 0x437   : > { %s1363_s27 = smov 128   ;;  %s1364_s25 = smov 8  }
 0x438   : > { %1208 = dma.vmem_to_hbm [thread:$0]  (%p1656_p9), %s1585_s21, 256, %s1590_s30, %s1592_s12, %s1363_s27, %s1363_s27, %s1364_s25  }
 0x439 PF: > { %p1220_p2 = scmp.ge.s32.totalorder %s1355_s16, 2  ;;  %s908_s28 = sand.u32 1, %s1343_s13  }
 0x43a   : > { %p1657_p3 = scmp.ne.s32.totalorder %s1649_s24, 0  ;;  %s909_s18 = scalar_lea.sflag [#allocation4], %s908_s28 }
 0x43c   : > { %p1215_p4 = pnand %p1220_p2, %p1657_p3 }
 0x43e   : > { %1338 = dma.done.wait (!%p1215_p4), %s909_s18, 256  }
 0x43f   : > { %1340 = vsyncadd (!%p1215_p4), %s909_s18, 4294967040  ;;  %p21_p7 = scmp.ge.s32.totalorder %s1445_s19, 6   ;;  %s1658_s13 = smov %s1347_s14 }
 0x440   : > { %s1659_s14 = smov %s1351_s15  ;;  %s1660_s15 = smov %s1456_s22 }
 0x441   : > { %s1661_s16 = smov %s1445_s19  ;;  %23 = sbr.rel (!%p21_p7) target bundleno = 4 (0x4), region = 103 }
 0x448   :  { %914 = vsyncpa [#allocation3], 1 }
 0x449   :  { %916 = vsyncpa [#allocation3 + $0x1], 1 }
 0x44a   :  { %917 = vsyncpa [#allocation4], 1 }
 0x44b   :  { %919 = vsyncpa [#allocation4 + $0x1], 1 }

</bundles_post_ra>
